<compile_context>
chip_gen: v6e
topology: v6e:2x2x1
jax: 0.10.0
libtpu: 0.0.40
codegen_flags: <defaults>
</compile_context>

<pallas_src>
import jax
import jax.numpy as jnp
from jax.experimental import pallas as pl
from jax.experimental.pallas import tpu as pltpu

_LANES = 128
_SUBLANES = 8


def _round_up(n, m):
    return ((n + m - 1) // m) * m


# ---------------------------------------------------------------------------
# Kernel
# ---------------------------------------------------------------------------
def classifier_kernel(x_ref, wa_ref, ba_ref, wb_ref, bb_ref, wc_ref, bc_ref, out_ref):
    cdt = wa_ref.dtype                 # compute dtype of the matmul inputs (bf16 or f32)
    out_size = out_ref.shape[-1]       # real (unpadded) number of classes

    # cast x in-kernel (avoids a separate HBM read+write pass in the wrapper)
    x = x_ref[...].astype(cdt)

    # linear_a + ReLU  (MXU matmul, fp32 accumulation; bias/ReLU in fp32)
    h_a = jnp.dot(x, wa_ref[...], preferred_element_type=jnp.float32) + ba_ref[...]
    h_a = jnp.maximum(h_a, 0.0).astype(cdt)

    # linear_b + ReLU
    h_b = jnp.dot(h_a, wb_ref[...], preferred_element_type=jnp.float32) + bb_ref[...]
    h_b = jnp.maximum(h_b, 0.0).astype(cdt)

    # to_class_size: logits computed on a lane-dense (padded to 128) vreg; padded
    # columns carry bias -1e30 so exp() underflows to exactly 0 -> log-sum-exp unchanged.
    logits = jnp.dot(h_b, wc_ref[...], preferred_element_type=jnp.float32) + bc_ref[...]

    # LogSoftmax(dim=-1), numerically stable; exp/log run on the EUP slot.
    m = jnp.max(logits, axis=-1, keepdims=True)
    shifted = logits - m
    lse = jnp.log(jnp.sum(jnp.exp(shifted), axis=-1, keepdims=True))

    # store only the real classes (unpadded, 8x fewer HBM writeback bytes)
    out_ref[...] = (shifted[:, :out_size] - lse).astype(out_ref.dtype)


# ---------------------------------------------------------------------------
# One-time parameter preparation (hoisted out of the per-call hot path)
# ---------------------------------------------------------------------------
def prepare_classifier_params(wa, ba, wb, bb, wc, bc, *, compute_dtype=jnp.bfloat16):
    """Casts weights to the compute dtype and lane-pads the classifier head once."""
    out_size = wc.shape[1]
    padded_out = _round_up(out_size, _LANES)

    wc_f = wc.astype(jnp.float32)
    bc_f = bc.astype(jnp.float32).reshape(1, -1)
    if padded_out != out_size:
        wc_f = jnp.zeros((wc.shape[0], padded_out), jnp.float32).at[:, :out_size].set(wc_f)
        bc_f = jnp.full((1, padded_out), -1e30, jnp.float32).at[:, :out_size].set(bc_f)

    return {
        "wa": wa.astype(compute_dtype),
        "ba": ba.astype(jnp.float32).reshape(1, -1),
        "wb": wb.astype(compute_dtype),
        "bb": bb.astype(jnp.float32).reshape(1, -1),
        "wc": wc_f.astype(compute_dtype),
        "bc": bc_f,                       # fp32, lane-padded with -1e30
        "out_size": out_size,
    }


def _choose_block_b(B, *, max_tb=4096, min_rows=512, target_steps=4):
    """Batch tile: >= target_steps grid steps when B is large (v7x megacore + pipeline),
    each step >= min_rows to amortize ~0.35us/step overhead, capped at max_tb rows."""
    tb = _round_up(pl.cdiv(B, target_steps), _SUBLANES)
    tb = max(tb, min_rows)
    tb = min(tb, max_tb)
    tb = min(tb, _round_up(B, _SUBLANES))
    return max(tb, _SUBLANES)


# ---------------------------------------------------------------------------
# Forward
# ---------------------------------------------------------------------------
def classifier_forward(x, params, *, block_b=None, out_dtype=jnp.float32):
    """Fused Classifier forward as a single batch-tiled Pallas kernel."""
    B, encoding_dim = x.shape
    wa, ba = params["wa"], params["ba"]
    wb, bb = params["wb"], params["bb"]
    wc, bc = params["wc"], params["bc"]
    out_size = params["out_size"]

    hidden_a = wa.shape[1]
    hidden_b = wb.shape[1]
    padded_out = wc.shape[1]

    if block_b is None:
        TB = _choose_block_b(B)
    else:
        TB = min(_round_up(block_b, _SUBLANES), _round_up(B, _SUBLANES))

    grid = (pl.cdiv(B, TB),)  # ragged last block handled by Pallas (rows >= B never stored)

    resident = lambda shape: pl.BlockSpec(shape, lambda i: (0, 0))  # stays in VMEM across steps

    out = pl.pallas_call(
        classifier_kernel,
        out_shape=jax.ShapeDtypeStruct((B, out_size), out_dtype),
        grid=grid,
        in_specs=[
            pl.BlockSpec((TB, encoding_dim), lambda i: (i, 0)),   # x tile (pipelined)
            resident((encoding_dim, hidden_a)),                   # Wa
            resident((1, hidden_a)),                              # ba
            resident((hidden_a, hidden_b)),                       # Wb
            resident((1, hidden_b)),                              # bb
            resident((hidden_b, padded_out)),                     # Wc (lane-padded)
            resident((1, padded_out)),                            # bc (lane-padded, -1e30)
        ],
        out_specs=pl.BlockSpec((TB, out_size), lambda i: (i, 0)), # unpadded writeback
        compiler_params=pltpu.CompilerParams(
            dimension_semantics=("parallel",),                    # megacore sharding on v7x
        ),
    )(x, wa, ba, wb, bb, wc, bc)

    return out


# ---------------------------------------------------------------------------
# Parameter init matching the PyTorch module
# ---------------------------------------------------------------------------
def xavier_uniform(key, fan_in, fan_out):
    # matches nn.init.xavier_uniform_ on a (out, in) weight; stored here as (in, out)
    bound = (6.0 / (fan_in + fan_out)) ** 0.5
    return jax.random.uniform(key, (fan_in, fan_out), jnp.float32, -bound, bound)


def linear_bias(key, fan_in, fan_out):
    # PyTorch nn.Linear default bias init: U(-1/sqrt(fan_in), 1/sqrt(fan_in))
    bound = 1.0 / (fan_in ** 0.5)
    return jax.random.uniform(key, (1, fan_out), jnp.float32, -bound, bound)


def _reference(x, wa, ba, wb, bb, wc, bc, compute_dtype):
    """Pure-JAX reference mirroring the kernel's dtype policy."""
    xc = x.astype(compute_dtype)
    h_a = jnp.maximum(
        jnp.dot(xc, wa.astype(compute_dtype), preferred_element_type=jnp.float32) + ba, 0.0)
    h_b = jnp.maximum(
        jnp.dot(h_a.astype(compute_dtype), wb.astype(compute_dtype),
                preferred_element_type=jnp.float32) + bb, 0.0)
    logits = jnp.dot(h_b.astype(compute_dtype), wc.astype(compute_dtype),
                     preferred_element_type=jnp.float32) + bc
    return jax.nn.log_softmax(logits, axis=-1)


if __name__ == "__main__":
    # Small shapes consistent with the module: Classifier(32, 64, 32, 16)
    batch = 8
    encoding_dim, hidden_a, hidden_b, output_size = 32, 64, 32, 16

    key = jax.random.PRNGKey(0)
    kx, kwa, kba, kwb, kbb, kwc, kbc, kx2 = jax.random.split(key, 8)

    x = jax.random.normal(kx, (batch, encoding_dim), jnp.float32)

    wa = xavier_uniform(kwa, encoding_dim, hidden_a)
    ba = linear_bias(kba, encoding_dim, hidden_a)
    wb = xavier_uniform(kwb, hidden_a, hidden_b)
    bb = linear_bias(kbb, hidden_a, hidden_b)
    wc = xavier_uniform(kwc, hidden_b, output_size)
    bc = linear_bias(kbc, hidden_b, output_size)

    # 1) fp32 compute mode: exact check against fp32 reference
    params_f32 = prepare_classifier_params(wa, ba, wb, bb, wc, bc,
                                           compute_dtype=jnp.float32)
    out_f32 = classifier_forward(x, params_f32)
    out_f32 = jax.block_until_ready(out_f32)
    ref_f32 = _reference(x, wa, ba, wb, bb, wc, bc, jnp.float32)
    assert out_f32.shape == (batch, output_size)
    assert jnp.allclose(out_f32, ref_f32, atol=1e-5, rtol=1e-5)

    # 2) bf16-in / fp32-acc mode (production config) vs matching reference
    params_bf16 = prepare_classifier_params(wa, ba, wb, bb, wc, bc,
                                            compute_dtype=jnp.bfloat16)
    out_bf16 = classifier_forward(x, params_bf16)
    out_bf16 = jax.block_until_ready(out_bf16)
    ref_bf16 = _reference(x, wa, ba, wb, bb, wc, bc, jnp.bfloat16)
    assert jnp.allclose(out_bf16, ref_bf16, atol=5e-3, rtol=5e-3)
    # sanity vs full-fp32 math (bf16 rounding tolerance)
    assert jnp.allclose(out_bf16, ref_f32, atol=5e-2, rtol=5e-2)

    # 3) ragged multi-step batch grid (B not a multiple of TB; no wrapper pad/slice)
    x_big = jax.random.normal(kx2, (20, encoding_dim), jnp.float32)
    out_big = classifier_forward(x_big, params_f32, block_b=8)   # grid=(3,), last block ragged
    out_big = jax.block_until_ready(out_big)
    ref_big = _reference(x_big, wa, ba, wb, bb, wc, bc, jnp.float32)
    assert out_big.shape == (20, output_size)
    assert jnp.allclose(out_big, ref_big, atol=1e-5, rtol=1e-5)

    # 4) auto tile-size path (adaptive TB, ragged last block)
    x_med = jax.random.normal(kx2, (1037, encoding_dim), jnp.float32)
    out_med = classifier_forward(x_med, params_f32)              # TB=512 -> grid=(3,)
    out_med = jax.block_until_ready(out_med)
    ref_med = _reference(x_med, wa, ba, wb, bb, wc, bc, jnp.float32)
    assert out_med.shape == (1037, output_size)
    assert jnp.allclose(out_med, ref_med, atol=1e-5, rtol=1e-5)

    print("KERNEL_OK")
</pallas_src>

<mosaic_0001>
module attributes {stable_mosaic.version = 11 : i64} {
  func.func @classifier_kernel(%arg0: i32, %arg1: memref<8x32xf32, #tpu.memory_space<vmem>>, %arg2: memref<32x64xf32, #tpu.memory_space<vmem>>, %arg3: memref<1x64xf32, #tpu.memory_space<vmem>>, %arg4: memref<64x32xf32, #tpu.memory_space<vmem>>, %arg5: memref<1x32xf32, #tpu.memory_space<vmem>>, %arg6: memref<32x128xf32, #tpu.memory_space<vmem>>, %arg7: memref<1x128xf32, #tpu.memory_space<vmem>>, %arg8: memref<8x16xf32, #tpu.memory_space<vmem>>) attributes {dimension_semantics = [#tpu.dimension_semantics<parallel>], iteration_bounds = array<i64: 1>, scalar_prefetch = 0 : i64, scratch_operands = 0 : i64, tpu.core_type = #tpu.core_type<tc>, window_params = [{transform_indices = @transform_0, window_bounds = array<i64: 8, 32>}, {pipeline_mode = #tpu.pipeline_mode<synchronous>, transform_indices = @transform_1, window_bounds = array<i64: 32, 64>}, {pipeline_mode = #tpu.pipeline_mode<synchronous>, transform_indices = @transform_2, window_bounds = array<i64: 1, 64>}, {pipeline_mode = #tpu.pipeline_mode<synchronous>, transform_indices = @transform_3, window_bounds = array<i64: 64, 32>}, {pipeline_mode = #tpu.pipeline_mode<synchronous>, transform_indices = @transform_4, window_bounds = array<i64: 1, 32>}, {pipeline_mode = #tpu.pipeline_mode<synchronous>, transform_indices = @transform_5, window_bounds = array<i64: 32, 128>}, {pipeline_mode = #tpu.pipeline_mode<synchronous>, transform_indices = @transform_6, window_bounds = array<i64: 1, 128>}, {transform_indices = @transform_7, window_bounds = array<i64: 8, 16>}]} {
    %c0 = arith.constant 0 : index
    %c0_0 = arith.constant 0 : index
    %0 = vector.load %arg1[%c0, %c0_0] : memref<8x32xf32, #tpu.memory_space<vmem>>, vector<8x32xf32>
    %c0_1 = arith.constant 0 : index
    %c0_2 = arith.constant 0 : index
    %1 = vector.load %arg2[%c0_1, %c0_2] : memref<32x64xf32, #tpu.memory_space<vmem>>, vector<32x64xf32>
    %cst = arith.constant dense<0.000000e+00> : vector<8x64xf32>
    %2 = tpu.matmul %0, %1, %cst {dimension_numbers = #tpu.dot_dimension_numbers<[1], [0], [0], [1], [0, 0, 1, 1], [], []>} : vector<8x32xf32>, vector<32x64xf32>, vector<8x64xf32> -> vector<8x64xf32>
    %c0_3 = arith.constant 0 : index
    %c0_4 = arith.constant 0 : index
    %3 = vector.load %arg3[%c0_3, %c0_4] : memref<1x64xf32, #tpu.memory_space<vmem>>, vector<1x64xf32>
    %4 = vector.broadcast %3 : vector<1x64xf32> to vector<8x64xf32>
    %5 = arith.addf %2, %4 : vector<8x64xf32>
    %cst_5 = arith.constant 0.000000e+00 : f32
    %6 = vector.broadcast %cst_5 : f32 to vector<8x64xf32>
    %7 = arith.maximumf %5, %6 : vector<8x64xf32>
    %c0_6 = arith.constant 0 : index
    %c0_7 = arith.constant 0 : index
    %8 = vector.load %arg4[%c0_6, %c0_7] : memref<64x32xf32, #tpu.memory_space<vmem>>, vector<64x32xf32>
    %cst_8 = arith.constant dense<0.000000e+00> : vector<8x32xf32>
    %9 = tpu.matmul %7, %8, %cst_8 {dimension_numbers = #tpu.dot_dimension_numbers<[1], [0], [0], [1], [0, 0, 1, 1], [], []>} : vector<8x64xf32>, vector<64x32xf32>, vector<8x32xf32> -> vector<8x32xf32>
    %c0_9 = arith.constant 0 : index
    %c0_10 = arith.constant 0 : index
    %10 = vector.load %arg5[%c0_9, %c0_10] : memref<1x32xf32, #tpu.memory_space<vmem>>, vector<1x32xf32>
    %11 = vector.broadcast %10 : vector<1x32xf32> to vector<8x32xf32>
    %12 = arith.addf %9, %11 : vector<8x32xf32>
    %cst_11 = arith.constant 0.000000e+00 : f32
    %13 = vector.broadcast %cst_11 : f32 to vector<8x32xf32>
    %14 = arith.maximumf %12, %13 : vector<8x32xf32>
    %c0_12 = arith.constant 0 : index
    %c0_13 = arith.constant 0 : index
    %15 = vector.load %arg6[%c0_12, %c0_13] : memref<32x128xf32, #tpu.memory_space<vmem>>, vector<32x128xf32>
    %cst_14 = arith.constant dense<0.000000e+00> : vector<8x128xf32>
    %16 = tpu.matmul %14, %15, %cst_14 {dimension_numbers = #tpu.dot_dimension_numbers<[1], [0], [0], [1], [0, 0, 1, 1], [], []>} : vector<8x32xf32>, vector<32x128xf32>, vector<8x128xf32> -> vector<8x128xf32>
    %c0_15 = arith.constant 0 : index
    %c0_16 = arith.constant 0 : index
    %17 = vector.load %arg7[%c0_15, %c0_16] : memref<1x128xf32, #tpu.memory_space<vmem>>, vector<1x128xf32>
    %18 = vector.broadcast %17 : vector<1x128xf32> to vector<8x128xf32>
    %19 = arith.addf %16, %18 : vector<8x128xf32>
    %cst_17 = arith.constant dense<0xFF800000> : vector<8xf32>
    %20 = vector.multi_reduction <maximumf>, %19, %cst_17 [1] : vector<8x128xf32> to vector<8xf32>
    %21 = vector.shape_cast %20 : vector<8xf32> to vector<8x1xf32>
    %22 = vector.broadcast %21 : vector<8x1xf32> to vector<8x128xf32>
    %23 = arith.subf %19, %22 : vector<8x128xf32>
    %24 = math.exp %23 : vector<8x128xf32>
    %cst_18 = arith.constant dense<0.000000e+00> : vector<8xf32>
    %25 = vector.multi_reduction <add>, %24, %cst_18 [1] : vector<8x128xf32> to vector<8xf32>
    %26 = vector.shape_cast %25 : vector<8xf32> to vector<8x1xf32>
    %27 = math.log %26 : vector<8x1xf32>
    %28 = vector.extract_strided_slice %23 {offsets = [0, 0], sizes = [8, 16], strides = [1, 1]} : vector<8x128xf32> to vector<8x16xf32>
    %29 = vector.broadcast %27 : vector<8x1xf32> to vector<8x16xf32>
    %30 = arith.subf %28, %29 : vector<8x16xf32>
    %c0_19 = arith.constant 0 : index
    %c0_20 = arith.constant 0 : index
    %31 = vector.load %arg8[%c0_19, %c0_20] : memref<8x16xf32, #tpu.memory_space<vmem>>, vector<8x16xf32>
    tpu.vector_store %arg8[%c0_19, %c0_20], %30 {strides = array<i32>} : memref<8x16xf32, #tpu.memory_space<vmem>>, vector<8x16xf32>,
    return
  }
  func.func @transform_0(%arg0: i32) -> (i32, i32) {
    %c0_i32 = arith.constant 0 : i32
    %c0_i32_0 = arith.constant 0 : i32
    return %arg0, %c0_i32 : i32, i32
  }
  func.func @transform_1(%arg0: i32) -> (i32, i32) {
    %c0_i32 = arith.constant 0 : i32
    %c0_i32_0 = arith.constant 0 : i32
    %c0_i32_1 = arith.constant 0 : i32
    return %c0_i32, %c0_i32_0 : i32, i32
  }
  func.func @transform_2(%arg0: i32) -> (i32, i32) {
    %c0_i32 = arith.constant 0 : i32
    %c0_i32_0 = arith.constant 0 : i32
    %c0_i32_1 = arith.constant 0 : i32
    return %c0_i32, %c0_i32_0 : i32, i32
  }
  func.func @transform_3(%arg0: i32) -> (i32, i32) {
    %c0_i32 = arith.constant 0 : i32
    %c0_i32_0 = arith.constant 0 : i32
    %c0_i32_1 = arith.constant 0 : i32
    return %c0_i32, %c0_i32_0 : i32, i32
  }
  func.func @transform_4(%arg0: i32) -> (i32, i32) {
    %c0_i32 = arith.constant 0 : i32
    %c0_i32_0 = arith.constant 0 : i32
    %c0_i32_1 = arith.constant 0 : i32
    return %c0_i32, %c0_i32_0 : i32, i32
  }
  func.func @transform_5(%arg0: i32) -> (i32, i32) {
    %c0_i32 = arith.constant 0 : i32
    %c0_i32_0 = arith.constant 0 : i32
    %c0_i32_1 = arith.constant 0 : i32
    return %c0_i32, %c0_i32_0 : i32, i32
  }
  func.func @transform_6(%arg0: i32) -> (i32, i32) {
    %c0_i32 = arith.constant 0 : i32
    %c0_i32_0 = arith.constant 0 : i32
    %c0_i32_1 = arith.constant 0 : i32
    return %c0_i32, %c0_i32_0 : i32, i32
  }
  func.func @transform_7(%arg0: i32) -> (i32, i32) {
    %c0_i32 = arith.constant 0 : i32
    %c0_i32_0 = arith.constant 0 : i32
    return %arg0, %c0_i32 : i32, i32
  }
}

</mosaic_0001>

<bundles_post_ra>
// kernel: tpu_custom_call.1
= control target key start
LH: loop header
LB: loop body
LE: loop exit
PB: predicated region body
PF: predicated region fallthrough
CT: control target
= control target key end

     0   :  { %v409_v1 = vmov 0.0   ;;  %vm410_vm0 = vmmov 0   ;;  %s520_s0 = inlined_call_operand.vmem [shape: f32[8,32], index: 0, kind: input, shape index: {}]   ;;  %s521_s1 = inlined_call_operand.vmem [shape: f32[32,64], index: 1, kind: input, shape index: {}]   ;;  %s522_s2 = inlined_call_operand.vmem [shape: f32[1,64], index: 2, kind: input, shape index: {}]   ;;  %s523_s3 = inlined_call_operand.vmem [shape: f32[64,32], index: 3, kind: input, shape index: {}]   ;;  %s524_s4 = inlined_call_operand.vmem [shape: f32[1,32], index: 4, kind: input, shape index: {}]   ;;  %s525_s5 = inlined_call_operand.vmem [shape: f32[32,128], index: 5, kind: input, shape index: {}]   ;;  %s526_s6 = inlined_call_operand.vmem [shape: f32[1,128], index: 6, kind: input, shape index: {}]   ;;  %s527_s7 = inlined_call_operand.hbm [shape: f32[8,16], index: 7, kind: output, shape index: {}]  }
   0x1   :  { %v31_v0 = vld [vmem:[%s521_s1 + $0x18] sm:$0xff]  ;;  %339 = vmatprep.subr.mxu0 %v409_v1  ;;  %v30_v2 = vld [vmem:[%s521_s1 + $0x10] sm:$0xff]  ;;  %347 = vmatprep.mubr.msk.f32.mxu0 %vm410_vm0, %v409_v1  ;;  %v29_v5 = vld [vmem:[%s521_s1 + $0x8] sm:$0xff] }
   0x2   :  { %v121_v3 = vld [vmem:[%s523_s3 + $0x38] sm:$0xff]  ;;  %340 = vmatpush3.msra.mxu0 %v31_v0  ;;  %350 = vmatprep.subr.mxu1 %v409_v1  ;;  %v120_v4 = vld [vmem:[%s523_s3 + $0x30] sm:$0xff] }
   0x3   :  { %341 = vmatprep.subr.mxu0 %v409_v1  ;;  %351 = vmatpush3.msra.mxu1 %v121_v3 }
   0x4   :  { %12 = vsyncpa [#allocation3], 0  ;;  %342 = vmatpush3.msra.mxu0 %v30_v2  ;;  %352 = vmatprep.subr.mxu1 %v409_v1  ;;  %v119_v6 = vld [vmem:[%s523_s3 + $0x28] sm:$0xff]  ;;  %v28_v7 = vld [vmem:[%s521_s1] sm:$0xff]  ;;  %vm39_vm1 = vcmask 261120   ;;  %vm129_vm2 = vcmask 523264  }
   0x5   :  { %343 = vmatprep.subr.mxu0 %v409_v1  ;;  %353 = vmatpush3.msra.mxu1 %v120_v4  ;;  %v27_v8 = vld [vmem:[%s520_s0] sm:$0xff]  ;;  %v117_v10 = vld [vmem:[%s523_s3 + $0x18] sm:$0xff]  ;;  %v116_v11 = vld [vmem:[%s523_s3 + $0x10] sm:$0xff]  ;;  %vm298_vm3 = vcmask 130048  }
   0x6   :  { %344 = vmatpush3.msra.mxu0 %v29_v5  ;;  %354 = vmatprep.subr.mxu1 %v409_v1  ;;  %v118_v9 = vld [vmem:[%s523_s3 + $0x20] sm:$0xff]  ;;  %v115_v12 = vld [vmem:[%s523_s3 + $0x8] sm:$0xff]  ;;  %v207_v14 = vld [vmem:[%s525_s5 + $0x18] sm:$0xff] }
   0x7   :  { %345 = vmatprep.subr.mxu0 %v409_v1  ;;  %355 = vmatpush3.msra.mxu1 %v119_v6  ;;  %v114_v13 = vld [vmem:[%s523_s3] sm:$0xff]  ;;  %v206_v20 = vld [vmem:[%s525_s5 + $0x10] sm:$0xff]  ;;  %v205_v21 = vld [vmem:[%s525_s5 + $0x8] sm:$0xff] }
   0x8   :  { %346 = vmatpush3.msra.mxu0 %v28_v7  ;;  %356 = vmatprep.subr.mxu1 %v409_v1  ;;  %v314_v15 = vld [vmem:[%s522_s2] ss:$0 sm:$0xff] }
   0x9   :  { %348 = vmatmul.mubr.msk.f32.vlgmr.msra.gmra.mxu0 %vm39_vm1, %v27_v8  ;;  %357 = vmatpush3.msra.mxu1 %v118_v9  ;;  %v204_v22 = vld [vmem:[%s525_s5] sm:$0xff] }
   0xa   :  { %358 = vmatprep.subr.mxu1 %v409_v1  ;;  %366 = vmatprep.mubr.msk.f32.mxu1 %vm410_vm0, %v409_v1  ;;  %v316_v23 = vld [vmem:[%s524_s4] ss:$0 sm:$0xff]  ;;  %s411_s4 = smov [#allocation2]  }
   0xb   :  { %359 = vmatpush3.msra.mxu1 %v117_v10  ;;  %369 = vmatprep.subr.mxu0 %v409_v1  ;;  %v318_v28 = vld [vmem:[%s526_s6] ss:$0 sm:$0xff]  ;;  %s306_s5 = sshll.u32 %s411_s4, 4  ;;  %s307_s5 = int_to_ptr.vmem [resolvable:$true] %s306_s5 }
   0xc   :  { %360 = vmatprep.subr.mxu1 %v409_v1  ;;  %377 = vmatprep.mubr.msk.f32.mxu0 %vm410_vm0, %v409_v1  ;;  %s387_s6 = scalar_lea.vmem %s307_s5, 128  ;;  %p392_p1 = scmp.lt.s32.totalorder %s307_s5, %s307_s5 }
   0xd   :  { %361 = vmatpush3.msra.mxu1 %v116_v11  ;;  %370 = vmatpush3.msra.mxu0 %v207_v14  ;;  %p388_p0 = scmp.ne.s32.totalorder %s307_s5, %s387_s6  ;;  %p393_p2 = scmp.lt.s32.totalorder %s387_s6, %s387_s6 }
   0xe   :  { %362 = vmatprep.subr.mxu1 %v409_v1  ;;  %371 = vmatprep.subr.mxu0 %v409_v1 }
   0xf   :  { %363 = vmatpush3.msra.mxu1 %v115_v12  ;;  %372 = vmatpush3.msra.mxu0 %v206_v20  ;;  %p394_p3 = por %p393_p2, %p392_p1 }
  0x10   :  { %364 = vmatprep.subr.mxu1 %v409_v1  ;;  %373 = vmatprep.subr.mxu0 %v409_v1 }
  0x11   :  { %365 = vmatpush3.msra.mxu1 %v114_v13  ;;  %374 = vmatpush3.msra.mxu0 %v205_v21  ;;  %p395_p4 = pnand %p394_p3, %p388_p0 }
  0x12   :  { %375 = vmatprep.subr.mxu0 %v409_v1 }
  0x13   :  { %376 = vmatpush3.msra.mxu0 %v204_v22 }
  0xc9   :  { %v109_v16 = vpop.f32.mrf.mxu0 }
  0xca   :  { %v110_v17 = vadd.f32 %v314_v15, %v109_v16 }
  0xcb   :  { %v349_v18 = vpop.f32.mrf.mxu0 }
  0xcc   :  { %v113_v19 = vmax.f32 %v110_v17, 0.0 }
  0xce   :  { %367 = vmatmul.mubr.msk.f32.vlgmr.msra.gmra.mxu1 %vm129_vm2, %v113_v19 }
 0x18e   :  { %v199_v24 = vpop.f32.mrf.mxu1 }
 0x18f   :  { %v200_v25 = vadd.f32 %v316_v23, %v199_v24 }
 0x190   :  { %v368_v26 = vpop.f32.mrf.mxu1 }
 0x191   :  { %v203_v27 = vmax.f32 %v200_v25, 0.0 }
 0x193   :  { %378 = vmatmul.mubr.msk.f32.vlgmr.msra.gmra.mxu0 %vm39_vm1, %v203_v27 }
 0x253   :  { %v284_v29 = vpop.f32.mrf.mxu0 }
 0x254   :  { %v285_v30 = vadd.f32 %v318_v28, %v284_v29 }
 0x255   :  { %v379_v31 = vpop.f32.mrf.mxu0 }
 0x256   :  { %288 = vmax.xlane.f32.xlu0 %v285_v30 }
 0x2df   :  { %v289_v32 = vpop.xlane.xlu0 %288 }
 0x2e0   :  { %v290_v33 = vsub.f32 %v285_v30, %v289_v32 }
 0x2e2   :  { %v291_v34 = vmul.f32 1.442695, %v290_v33 }
 0x2e4   :  { %383 = vpow2.f32 %v291_v34 }
 0x2f1   :  { %v384_v35 = vpop.eup %383 }
 0x2f2   :  { %293 = vadd.xlane.f32.xlu0 %v384_v35 }
 0x37b   :  { %v294_v36 = vpop.xlane.xlu0 %293 }
 0x37c   :  { %385 = vlog2.f32 %v294_v36 }
 0x389   :  { %v386_v37 = vpop.eup %385 }
 0x38a   :  { %v296_v38 = vmul.f32 0.6931472, %v386_v37 }
 0x38c   :  { %v297_v39 = vsub.f32 %v290_v33, %v296_v38 }
 0x38e   :  { %299 = vst.msk [vmem:[#allocation2] sm:$0xff] %vm298_vm3, %v297_v39 }
 0x38f   :  { %398 = shalt.err (!%p395_p4)
}
 0x390   :  { %309 = dma.vmem_to_hbm [thread:$0]  %s307_s5, 128, %s527_s7, [#allocation3]  }
 0x391   :  { %407 = dma.done.wait [#allocation3], 128  }
 0x392   :  { %408 = vsyncadd [#allocation3], 4294967168 }
 0x393   :  { %313 = vsyncpa [#allocation3], 1 }

</bundles_post_ra>
